<compile_context>
chip_gen: v7x
topology: tpu7x:2x2x1
jax: 0.10.0
libtpu: 0.0.40
codegen_flags: <defaults>
</compile_context>

<pallas_src>
import math

import jax
import jax.numpy as jnp
from jax.experimental import pallas as pl
from jax.experimental.pallas import tpu as pltpu


# xyz -> linear-rgb matrix (exact constants from kornia.color.xyz_to_rgb)
_XYZ2RGB = (
    (3.2404813432005266, -1.5371515162713185, -0.498536326168888),
    (-0.9692549499965682, 1.8759900014898907, 0.0415559265582928),
    (0.0556466391351772, -0.2040413383665112, 1.0573110696453443),
)

# Max flattened-spatial tile size (f32 elements per channel per grid step).
# Multiple of 8*128; 4 buffers (in+out, double-buffered) of 3 channels * TS * 4B
# = 12 MiB worst case.
_TS_MAX = 256 * 1024


def _xyz_to_linear_rgb(x, y, z):
    # 3x3 constant matrix as scalar FMAs on the VPU (do NOT use the MXU here).
    r = _XYZ2RGB[0][0] * x + _XYZ2RGB[0][1] * y + _XYZ2RGB[0][2] * z
    g = _XYZ2RGB[1][0] * x + _XYZ2RGB[1][1] * y + _XYZ2RGB[1][2] * z
    b = _XYZ2RGB[2][0] * x + _XYZ2RGB[2][1] * y + _XYZ2RGB[2][2] * z
    return r, g, b


def _linear_rgb_to_srgb(ch):
    # kornia.color.linear_rgb_to_rgb semantics
    thr = 0.0031308
    clamped = jnp.maximum(ch, thr)
    # pow(x, 1/2.4) via exp/log (EUP); clamped > 0 so log is safe.
    hi = 1.055 * jnp.exp(jnp.log(clamped) * (1.0 / 2.4)) - 0.055
    return jnp.where(ch > thr, hi, 12.92 * ch)


# ---------------------------- kernels ---------------------------------------


def _hsv_kernel(x_ref, o_ref):
    # kornia.color.hsv_to_rgb: h in [0, 2pi], s, v in [0, 1]
    h = x_ref[0, 0].astype(jnp.float32) * (1.0 / (2.0 * math.pi))
    s = x_ref[0, 1].astype(jnp.float32)
    v = x_ref[0, 2].astype(jnp.float32)

    h6 = h * 6.0
    fl = jnp.floor(h6)
    f = h6 - fl
    # h6 in [0, 6]: floor-only sector index; wrap the h == 2*pi edge so it
    # matches kornia's floor(h*6) % 6 (sector 6 -> 0, not clamp to 5).
    hi = jnp.where(fl >= 6.0, fl - 6.0, fl)

    p = v * (1.0 - s)
    q = v * (1.0 - f * s)
    t = v * (1.0 - (1.0 - f) * s)

    # Sector masks computed once and reused across all three channels.
    m0 = hi == 0.0
    m1 = hi == 1.0
    m2 = hi == 2.0
    m3 = hi == 3.0
    m4 = hi == 4.0

    def sel(c0, c1, c2, c3, c4, c5):
        return jnp.where(
            m0, c0,
            jnp.where(m1, c1,
                      jnp.where(m2, c2,
                                jnp.where(m3, c3,
                                          jnp.where(m4, c4, c5)))))

    r = sel(v, q, p, p, t, v)
    g = sel(t, v, v, q, p, p)
    b = sel(p, p, t, v, v, q)

    o_ref[0, 0] = r.astype(o_ref.dtype)
    o_ref[0, 1] = g.astype(o_ref.dtype)
    o_ref[0, 2] = b.astype(o_ref.dtype)


def _xyz_kernel(x_ref, o_ref):
    # kornia.color.xyz_to_rgb
    x = x_ref[0, 0].astype(jnp.float32)
    y = x_ref[0, 1].astype(jnp.float32)
    z = x_ref[0, 2].astype(jnp.float32)
    r, g, b = _xyz_to_linear_rgb(x, y, z)
    o_ref[0, 0] = r.astype(o_ref.dtype)
    o_ref[0, 1] = g.astype(o_ref.dtype)
    o_ref[0, 2] = b.astype(o_ref.dtype)


def _luv_kernel(x_ref, o_ref):
    # kornia.color.luv_to_rgb (eps = 1e-12)
    eps = 1e-12
    L = x_ref[0, 0].astype(jnp.float32)
    u = x_ref[0, 1].astype(jnp.float32)
    v = x_ref[0, 2].astype(jnp.float32)

    y = jnp.where(L > 7.999625, ((L + 16.0) * (1.0 / 116.0)) ** 3, L * (1.0 / 903.3))

    xw, yw, zw = 0.95047, 1.0, 1.08883
    u_w = (4.0 * xw) / (xw + 15.0 * yw + 3.0 * zw)  # python-scalar constants
    v_w = (9.0 * yw) / (xw + 15.0 * yw + 3.0 * zw)

    # One reciprocal (EUP) reused for both a and d instead of two divides.
    # NOTE: approx=True trades ~1e-3-level relative error on the divides for
    # EUP throughput (it matters on v7x where the luv path is EUP-bound).
    inv_13L = pl.reciprocal(13.0 * L + eps, approx=True)
    a = u_w + u * inv_13L
    d = v_w + v * inv_13L

    c = 3.0 * y * (5.0 * d - 3.0)
    # Single reciprocal of (d + eps) reused for the c/(d+eps) and /(12*d+eps)
    # terms (1/(12*d+eps) ~= inv_d/12 up to the 1e-12 guard).
    inv_d = pl.reciprocal(d + eps, approx=True)
    z = ((a - 4.0) * c - 15.0 * a * d * y) * (inv_d * (1.0 / 12.0))
    x = -(c * inv_d + 3.0 * z)

    r, g, b = _xyz_to_linear_rgb(x, y, z)

    o_ref[0, 0] = _linear_rgb_to_srgb(r).astype(o_ref.dtype)
    o_ref[0, 1] = _linear_rgb_to_srgb(g).astype(o_ref.dtype)
    o_ref[0, 2] = _linear_rgb_to_srgb(b).astype(o_ref.dtype)


_KERNELS = {"hsv": _hsv_kernel, "xyz": _xyz_kernel, "luv": _luv_kernel}


# ---------------------------- wrapper ----------------------------------------


def space2rgb(x, target_space: str):
    """Pallas equivalent of Space2Rgb(target_space).forward(x). x: (B, 3, H, W)."""
    if target_space == "rgb":
        return x  # identity branch, no kernel needed
    if target_space not in _KERNELS:
        raise ValueError("this should not happen")

    B, C, H, W = x.shape
    assert C == 3, "color conversion expects 3 channels"
    HW = H * W

    # Lane-dense flattened spatial axis; free metadata reshape on contiguous NCHW.
    x_flat = x.reshape(B, C, HW)

    # Tile the flattened spatial dim: full extent for small images (satisfies
    # the "equal full dim" rule even when HW % 128 != 0), otherwise a 256K-lane
    # tile (multiple of 8*128).  Partial last tiles are handled by Pallas
    # masking (pure elementwise math, so padded lanes are harmless).
    ts = HW if HW <= _TS_MAX else _TS_MAX
    n_tiles = pl.cdiv(HW, ts)

    out_flat = pl.pallas_call(
        _KERNELS[target_space],
        out_shape=jax.ShapeDtypeStruct((B, C, HW), x.dtype),
        grid=(B, n_tiles),
        in_specs=[pl.BlockSpec((1, C, ts), lambda b, t: (b, 0, t))],
        out_specs=pl.BlockSpec((1, C, ts), lambda b, t: (b, 0, t)),
        compiler_params=pltpu.CompilerParams(
            # Both axes independent -> megacore sharding on v7x even for B=1.
            dimension_semantics=("parallel", "parallel"),
            # Worst-case residency is 12 MiB (in+out, double-buffered); 32 MiB
            # is within every generation's VMEM (v7x physical = 64 MiB) and
            # clears v5e's 16 MiB scoped default.
            vmem_limit_bytes=32 * 1024 * 1024,
        ),
    )(x_flat)

    return out_flat.reshape(B, C, H, W)


# ---------------------------- demo --------------------------------------------


if __name__ == "__main__":
    key = jax.random.PRNGKey(0)
    k_hsv, k_xyz, k_luv, k_rgb = jax.random.split(key, 4)
    B, C, H, W = 2, 3, 16, 16

    # hsv input: h in [0, 2pi], s/v in [0, 1]
    hsv_raw = jax.random.uniform(k_hsv, (B, C, H, W), dtype=jnp.float32)
    hsv_in = hsv_raw.at[:, 0].multiply(2.0 * math.pi)

    # xyz input: positive values roughly in [0, 1]
    xyz_in = jax.random.uniform(k_xyz, (B, C, H, W), dtype=jnp.float32)

    # luv input: L in [1, 100], u/v in [-50, 50]
    luv_raw = jax.random.uniform(k_luv, (B, C, H, W), dtype=jnp.float32)
    luv_in = jnp.stack(
        [1.0 + 99.0 * luv_raw[:, 0], 100.0 * luv_raw[:, 1] - 50.0, 100.0 * luv_raw[:, 2] - 50.0],
        axis=1,
    )

    rgb_in = jax.random.uniform(k_rgb, (B, C, H, W), dtype=jnp.float32)

    out_hsv = jax.block_until_ready(space2rgb(hsv_in, "hsv"))
    out_xyz = jax.block_until_ready(space2rgb(xyz_in, "xyz"))
    out_luv = jax.block_until_ready(space2rgb(luv_in, "luv"))
    out_rgb = jax.block_until_ready(space2rgb(rgb_in, "rgb"))

    assert out_hsv.shape == (B, C, H, W)
    assert out_xyz.shape == (B, C, H, W)
    assert out_luv.shape == (B, C, H, W)
    assert out_rgb.shape == (B, C, H, W)
    assert jnp.isfinite(out_hsv).all() and jnp.isfinite(out_xyz).all() and jnp.isfinite(out_luv).all()

    print("KERNEL_OK")
</pallas_src>

<mosaic_0001>
module attributes {stable_mosaic.version = 11 : i64} {
  func.func @_hsv_kernel(%arg0: i32, %arg1: i32, %arg2: memref<1x3x256xf32, #tpu.memory_space<vmem>>, %arg3: memref<1x3x256xf32, #tpu.memory_space<vmem>>) attributes {dimension_semantics = [#tpu.dimension_semantics<parallel>, #tpu.dimension_semantics<parallel>], iteration_bounds = array<i64: 2, 1>, scalar_prefetch = 0 : i64, scratch_operands = 0 : i64, tpu.core_type = #tpu.core_type<tc>, window_params = [{transform_indices = @transform_0, window_bounds = array<i64: 1, 3, 256>}, {transform_indices = @transform_1, window_bounds = array<i64: 1, 3, 256>}]} {
    %c0 = arith.constant 0 : index
    %c0_0 = arith.constant 0 : index
    %c0_1 = arith.constant 0 : index
    %0 = vector.load %arg2[%c0, %c0_0, %c0_1] : memref<1x3x256xf32, #tpu.memory_space<vmem>>, vector<1x1x256xf32>
    %1 = vector.shape_cast %0 : vector<1x1x256xf32> to vector<256xf32>
    %cst = arith.constant 0.159154937 : f32
    %2 = vector.broadcast %cst : f32 to vector<256xf32>
    %3 = arith.mulf %1, %2 : vector<256xf32>
    %c0_2 = arith.constant 0 : index
    %c1 = arith.constant 1 : index
    %c0_3 = arith.constant 0 : index
    %4 = vector.load %arg2[%c0_2, %c1, %c0_3] : memref<1x3x256xf32, #tpu.memory_space<vmem>>, vector<1x1x256xf32>
    %5 = vector.shape_cast %4 : vector<1x1x256xf32> to vector<256xf32>
    %c0_4 = arith.constant 0 : index
    %c2 = arith.constant 2 : index
    %c0_5 = arith.constant 0 : index
    %6 = vector.load %arg2[%c0_4, %c2, %c0_5] : memref<1x3x256xf32, #tpu.memory_space<vmem>>, vector<1x1x256xf32>
    %7 = vector.shape_cast %6 : vector<1x1x256xf32> to vector<256xf32>
    %cst_6 = arith.constant 6.000000e+00 : f32
    %8 = vector.broadcast %cst_6 : f32 to vector<256xf32>
    %9 = arith.mulf %3, %8 : vector<256xf32>
    %10 = math.floor %9 : vector<256xf32>
    %11 = arith.subf %9, %10 : vector<256xf32>
    %cst_7 = arith.constant 6.000000e+00 : f32
    %12 = vector.broadcast %cst_7 : f32 to vector<256xf32>
    %13 = arith.cmpf oge, %10, %12 : vector<256xf32>
    %cst_8 = arith.constant 6.000000e+00 : f32
    %14 = vector.broadcast %cst_8 : f32 to vector<256xf32>
    %15 = arith.subf %10, %14 : vector<256xf32>
    %16 = arith.select %13, %15, %10 : vector<256xi1>, vector<256xf32>
    %cst_9 = arith.constant 1.000000e+00 : f32
    %17 = vector.broadcast %cst_9 : f32 to vector<256xf32>
    %18 = arith.subf %17, %5 : vector<256xf32>
    %19 = arith.mulf %7, %18 : vector<256xf32>
    %20 = arith.mulf %11, %5 : vector<256xf32>
    %cst_10 = arith.constant 1.000000e+00 : f32
    %21 = vector.broadcast %cst_10 : f32 to vector<256xf32>
    %22 = arith.subf %21, %20 : vector<256xf32>
    %23 = arith.mulf %7, %22 : vector<256xf32>
    %cst_11 = arith.constant 1.000000e+00 : f32
    %24 = vector.broadcast %cst_11 : f32 to vector<256xf32>
    %25 = arith.subf %24, %11 : vector<256xf32>
    %26 = arith.mulf %25, %5 : vector<256xf32>
    %cst_12 = arith.constant 1.000000e+00 : f32
    %27 = vector.broadcast %cst_12 : f32 to vector<256xf32>
    %28 = arith.subf %27, %26 : vector<256xf32>
    %29 = arith.mulf %7, %28 : vector<256xf32>
    %cst_13 = arith.constant 0.000000e+00 : f32
    %30 = vector.broadcast %cst_13 : f32 to vector<256xf32>
    %31 = arith.cmpf oeq, %16, %30 : vector<256xf32>
    %cst_14 = arith.constant 1.000000e+00 : f32
    %32 = vector.broadcast %cst_14 : f32 to vector<256xf32>
    %33 = arith.cmpf oeq, %16, %32 : vector<256xf32>
    %cst_15 = arith.constant 2.000000e+00 : f32
    %34 = vector.broadcast %cst_15 : f32 to vector<256xf32>
    %35 = arith.cmpf oeq, %16, %34 : vector<256xf32>
    %cst_16 = arith.constant 3.000000e+00 : f32
    %36 = vector.broadcast %cst_16 : f32 to vector<256xf32>
    %37 = arith.cmpf oeq, %16, %36 : vector<256xf32>
    %cst_17 = arith.constant 4.000000e+00 : f32
    %38 = vector.broadcast %cst_17 : f32 to vector<256xf32>
    %39 = arith.cmpf oeq, %16, %38 : vector<256xf32>
    %40 = arith.select %39, %29, %7 : vector<256xi1>, vector<256xf32>
    %41 = arith.select %37, %19, %40 : vector<256xi1>, vector<256xf32>
    %42 = arith.select %35, %19, %41 : vector<256xi1>, vector<256xf32>
    %43 = arith.select %33, %23, %42 : vector<256xi1>, vector<256xf32>
    %44 = arith.select %31, %7, %43 : vector<256xi1>, vector<256xf32>
    %45 = arith.select %39, %19, %19 : vector<256xi1>, vector<256xf32>
    %46 = arith.select %37, %23, %45 : vector<256xi1>, vector<256xf32>
    %47 = arith.select %35, %7, %46 : vector<256xi1>, vector<256xf32>
    %48 = arith.select %33, %7, %47 : vector<256xi1>, vector<256xf32>
    %49 = arith.select %31, %29, %48 : vector<256xi1>, vector<256xf32>
    %50 = arith.select %39, %7, %23 : vector<256xi1>, vector<256xf32>
    %51 = arith.select %37, %7, %50 : vector<256xi1>, vector<256xf32>
    %52 = arith.select %35, %29, %51 : vector<256xi1>, vector<256xf32>
    %53 = arith.select %33, %19, %52 : vector<256xi1>, vector<256xf32>
    %54 = arith.select %31, %19, %53 : vector<256xi1>, vector<256xf32>
    %c0_18 = arith.constant 0 : index
    %c0_19 = arith.constant 0 : index
    %c0_20 = arith.constant 0 : index
    %55 = vector.load %arg3[%c0_18, %c0_19, %c0_20] : memref<1x3x256xf32, #tpu.memory_space<vmem>>, vector<1x1x256xf32>
    %56 = vector.shape_cast %55 : vector<1x1x256xf32> to vector<256xf32>
    %57 = vector.shape_cast %44 : vector<256xf32> to vector<1x1x256xf32>
    tpu.vector_store %arg3[%c0_18, %c0_19, %c0_20], %57 {strides = array<i32>} : memref<1x3x256xf32, #tpu.memory_space<vmem>>, vector<1x1x256xf32>,
    %c0_21 = arith.constant 0 : index
    %c1_22 = arith.constant 1 : index
    %c0_23 = arith.constant 0 : index
    %58 = vector.load %arg3[%c0_21, %c1_22, %c0_23] : memref<1x3x256xf32, #tpu.memory_space<vmem>>, vector<1x1x256xf32>
    %59 = vector.shape_cast %58 : vector<1x1x256xf32> to vector<256xf32>
    %60 = vector.shape_cast %49 : vector<256xf32> to vector<1x1x256xf32>
    tpu.vector_store %arg3[%c0_21, %c1_22, %c0_23], %60 {strides = array<i32>} : memref<1x3x256xf32, #tpu.memory_space<vmem>>, vector<1x1x256xf32>,
    %c0_24 = arith.constant 0 : index
    %c2_25 = arith.constant 2 : index
    %c0_26 = arith.constant 0 : index
    %61 = vector.load %arg3[%c0_24, %c2_25, %c0_26] : memref<1x3x256xf32, #tpu.memory_space<vmem>>, vector<1x1x256xf32>
    %62 = vector.shape_cast %61 : vector<1x1x256xf32> to vector<256xf32>
    %63 = vector.shape_cast %54 : vector<256xf32> to vector<1x1x256xf32>
    tpu.vector_store %arg3[%c0_24, %c2_25, %c0_26], %63 {strides = array<i32>} : memref<1x3x256xf32, #tpu.memory_space<vmem>>, vector<1x1x256xf32>,
    return
  }
  func.func @transform_0(%arg0: i32, %arg1: i32) -> (i32, i32, i32) {
    %c0_i32 = arith.constant 0 : i32
    %c0_i32_0 = arith.constant 0 : i32
    return %arg0, %c0_i32, %arg1 : i32, i32, i32
  }
  func.func @transform_1(%arg0: i32, %arg1: i32) -> (i32, i32, i32) {
    %c0_i32 = arith.constant 0 : i32
    %c0_i32_0 = arith.constant 0 : i32
    return %arg0, %c0_i32, %arg1 : i32, i32, i32
  }
}

</mosaic_0001>

<bundles_post_ra>
// kernel: tpu_custom_call.1
= control target key start
LH: loop header
LB: loop body
LE: loop exit
PB: predicated region body
PF: predicated region fallthrough
CT: control target
= control target key end

     0   :  { %s368_s6 = smov 0   ;;  %s370_s7 = smov 0   ;;  %s420_s0 = inlined_call_operand.vmem [shape: f32[2,3,256], index: 0, kind: input, shape index: {}]   ;;  %s421_s1 = inlined_call_operand.vmem [shape: f32[2,3,256], index: 1, kind: output, shape index: {}]  }
   0x1   :  { %s372_s8 = smov 0  }
   0x2 LB: > { %s23_s9 = sadd.s32 1, %s352_s7  ;;  %p296_p0 = scmp.ge.s32.totalorder %s356_s8, 1  ;;  %s356_s8 = sphi %s372_s8, %s11_s8   ;;  %s352_s7 = sphi %s370_s7, %s423_s7   ;;  %s348_s6 = sphi %s368_s6, %s422_s6  }
   0x3   : > { %p25_p1 = scmp.ge.s32.totalorder %s23_s9, 2  ;;  %p108_p2 = scmp.lt.s32.totalorder %s356_s8, 3 }
   0x5   : > { %s425_s9 = smov (%p25_p1, %s23_s9), 0  ;;  %p109_p3 = pnand %p296_p0, %p108_p2 }
   0x6   : > { %p137_p4 = scmp.lt.s32.totalorder (!%p109_p3), %s348_s6, 1  ;;  %v196_v15 = vlaneseq (!%p109_p3) }
   0x7   : > { %112 = sbr.rel (%p109_p3) target bundleno = 40 (0x28), region = 24 }
   0x8   : > { %vm198_vm6 = vcmp.lt.s32.totalorder (!%p109_p3), %v196_v15, 256 }
   0xe   : > { %s427_s6 = smov (!%p137_p4, %s348_s6), 1 }
   0xf   : > { %s308_s10 = sshll.u32 %s427_s6, 3 }
  0x10   : > { %s144_s13 = scalar_lea.vmem %s420_s0, %s308_s10  ;;  %s154_s16 = scalar_lea.vmem %s421_s1, %s308_s10 }
  0x11   : > { %v156_v0 = vld [vmem:[%s144_s13] ss:$4 sm:$0x3]  ;;  %v301_v4 = vld [vmem:[%s144_s13 + $0x1] ss:$4 sm:$0x3] }
  0x12   : > { %v157_v1 = vmul.f32 0.15915494, %v156_v0  ;;  %v168_v7 = vsub.f32 1.0, %v301_v4  ;;  %v302_v8 = vld [vmem:[%s144_s13 + $0x2] ss:$4 sm:$0x3] }
  0x14   : > { %v162_v2 = vmul.f32 6.0, %v157_v1  ;;  %v169_v12 = vmul.f32 %v302_v8, %v168_v7 }
  0x16   : > { %v163_v3 = vfloor.f32 %v162_v2 }
  0x18   : > { %v164_v5 = vsub.f32 %v162_v2, %v163_v3  ;;  %vm165_vm0 = vcmp.ge.f32.partialorder %v163_v3, 6.0  ;;  %v303_v6 = vadd.f32 -6.0, %v163_v3 }
  0x1a   : > { %v167_v9 = vsel %vm165_vm0, %v303_v6, %v163_v3  ;;  %v170_v10 = vmul.f32 %v301_v4, %v164_v5  ;;  %v173_v11 = vsub.f32 1.0, %v164_v5 }
  0x1b   : > { %vm180_vm1 = vcmp.eq.f32.partialorder %v167_v9, 3.0  ;;  %vm181_vm2 = vcmp.eq.f32.partialorder %v167_v9, 4.0  ;;  %vm179_vm3 = vcmp.eq.f32.partialorder %v167_v9, 2.0  ;;  %vm178_vm4 = vcmp.eq.f32.partialorder %v167_v9, 1.0 }
  0x1c   : > { %v171_v13 = vsub.f32 1.0, %v170_v10  ;;  %v174_v14 = vmul.f32 %v301_v4, %v173_v11  ;;  %vm177_vm5 = vcmp.eq.f32.partialorder %v167_v9, 0.0 }
  0x1e   : > { %v172_v16 = vmul.f32 %v302_v8, %v171_v13  ;;  %v175_v17 = vsub.f32 1.0, %v174_v14 }
  0x20   : > { %v176_v18 = vmul.f32 %v302_v8, %v175_v17  ;;  %v187_v19 = vsel %vm180_vm1, %v172_v16, %v169_v12  ;;  %v191_v20 = vsel %vm181_vm2, %v302_v8, %v172_v16 }
  0x21   : > { %v188_v21 = vsel %vm179_vm3, %v302_v8, %v187_v19  ;;  %v192_v22 = vsel %vm180_vm1, %v302_v8, %v191_v20 }
  0x22   : > { %v182_v23 = vsel %vm181_vm2, %v176_v18, %v302_v8  ;;  %v189_v24 = vsel %vm178_vm4, %v302_v8, %v188_v21  ;;  %v193_v25 = vsel %vm179_vm3, %v176_v18, %v192_v22 }
  0x23   : > { %v183_v26 = vsel %vm180_vm1, %v169_v12, %v182_v23  ;;  %v190_v27 = vsel %vm177_vm5, %v176_v18, %v189_v24  ;;  %v194_v28 = vsel %vm178_vm4, %v169_v12, %v193_v25 }
  0x24   : > { %v184_v29 = vsel %vm179_vm3, %v169_v12, %v183_v26  ;;  %304 = vst.msk [vmem:[%s154_s16 + $0x1] ss:$4 sm:$0x3] %vm198_vm6, %v190_v27  ;;  %v195_v30 = vsel %vm177_vm5, %v169_v12, %v194_v28 }
  0x25   : > { %v185_v31 = vsel %vm178_vm4, %v172_v16, %v184_v29  ;;  %305 = vst.msk [vmem:[%s154_s16 + $0x2] ss:$4 sm:$0x3] %vm198_vm6, %v195_v30 }
  0x26   : > { %v186_v32 = vsel %vm177_vm5, %v302_v8, %v185_v31 }
  0x27   : > { %200 = vst.msk [vmem:[%s154_s16] ss:$4 sm:$0x3] %vm198_vm6, %v186_v32 }
  0x28 PF: > { %s11_s8 = sadd.s32 1, %s356_s8   ;;  %s422_s6 = smov %s352_s7 }
  0x29   : > { %p8_p5 = scmp.ge.s32.totalorder %s11_s8, 4   ;;  %s423_s7 = smov %s425_s9 }
  0x2b   :  { %10 = sbr.rel (!%p8_p5) target bundleno = 2 (0x2), region = 58 }

</bundles_post_ra>
